<compile_context>
chip_gen: v7x
topology: tpu7x:2x2x1
jax: 0.10.0
libtpu: 0.0.40
codegen_flags: <defaults>
</compile_context>

<pallas_src>
import jax
import jax.numpy as jnp
from jax.experimental import pallas as pl
from jax.experimental.pallas import tpu as pltpu

EPS = 1e-5
NEG_SLOPE = 0.01


def _round_up(x, m):
    return (x + m - 1) // m * m


def _vmem_capacity_bytes():
    """Physical VMEM of the local TPU generation (64 MiB conservative fallback)."""
    try:
        cap = getattr(pltpu.get_tpu_info(), "vmem_capacity_bytes", None)
        if cap:
            return int(cap)
    except Exception:
        pass
    return 64 * 1024 * 1024


def _fast_path_bytes(c_in, c_out, S, isz_x, isz_o):
    """Approx VMEM needed by the single-pass kernel for one sample."""
    s128 = _round_up(S, 128)
    ci, co = _round_up(c_in, 8), _round_up(c_out, 8)
    return (2 * ci * s128 * isz_x      # x block, double buffered
            + 2 * co * s128 * isz_o    # out block, double buffered
            + 3 * co * s128 * 4)       # y, centered y, elementwise f32 temporaries


def _pick_tile_s(S, c_in, c_out, isz_x, isz_o, budget):
    """Largest lane-dense (multiple-of-128) spatial tile fitting the VMEM budget."""
    ci, co = _round_up(c_in, 8), _round_up(c_out, 8)
    best = 128
    for cand in (256, 512, 1024, 2048, 4096, 8192):
        if cand > _round_up(S, 128):
            break
        need = cand * (2 * ci * isz_x + 2 * co * isz_o + 3 * co * 4)
        if need > budget:
            break
        best = cand
    return best


def unet_grid_gating_signal3(x, weight, bias, gamma, beta, *,
                             tile_s=None, force_two_pass=False):
    """Forward of UnetGridGatingSignal3.

    x: (N, C_in, D, H, W); weight: (C_out, C_in); bias/gamma/beta: (C_out,).
    `bias` is accepted for API fidelity but intentionally unused: InstanceNorm's
    per-channel mean subtraction cancels a per-channel constant exactly.
    """
    del bias  # exactly cancelled by the instance-norm mean subtraction
    # TODO(synk): only the module-default kernel_size=(1,1,1), stride=(1,1,1)
    # (pointwise) convolution is implemented; strided / larger kernels are not.

    N, C_in, D, H, W = x.shape
    C_out = weight.shape[0]
    S = D * H * W
    out_dtype = x.dtype

    # Keep bf16 inputs bf16 into the MXU (faster bf16 MXU path, half the tile
    # footprint); f32 accumulation via preferred_element_type below.
    mm_dtype = jnp.bfloat16 if x.dtype == jnp.bfloat16 else jnp.float32
    w_mm = weight.astype(mm_dtype)
    g_col = gamma.reshape(C_out, 1).astype(jnp.float32)
    b_col = beta.reshape(C_out, 1).astype(jnp.float32)

    # No padding: blocks use full array dims or 128-multiples; ragged tails are
    # masked in-kernel, so no pad/slice HBM copies of x or the output.
    x_flat = x.reshape(N, C_in, S)

    cap = _vmem_capacity_bytes()
    vmem_limit = min(cap, max(32 * 1024 * 1024, int(cap * 0.8)))
    budget = int(vmem_limit * 0.7)

    isz_x = x.dtype.itemsize
    isz_o = jnp.dtype(out_dtype).itemsize

    # ---------------- fast path: whole per-sample slab in VMEM, one pass ---------
    if not force_two_pass and _fast_path_bytes(C_in, C_out, S, isz_x, isz_o) <= budget:

        def fused_kernel(w_ref, g_ref, b_ref, x_ref, o_ref):
            # Pointwise conv (bias dropped; cancelled by the mean subtraction).
            y = jnp.dot(w_ref[...], x_ref[...],
                        preferred_element_type=jnp.float32)          # (C_out, S) f32
            mean = jnp.mean(y, axis=-1, keepdims=True)               # exact: full S
            yc = y - mean
            var = jnp.mean(yc * yc, axis=-1, keepdims=True)          # centered var
            scale = g_ref[...] * jax.lax.rsqrt(var + EPS)
            yh = scale * yc + b_ref[...]
            o_ref[...] = jnp.where(yh >= 0, yh, NEG_SLOPE * yh).astype(o_ref.dtype)

        out_flat = pl.pallas_call(
            fused_kernel,
            out_shape=jax.ShapeDtypeStruct((N, C_out, S), out_dtype),
            grid_spec=pltpu.PrefetchScalarGridSpec(
                num_scalar_prefetch=0,
                grid=(N,),
                in_specs=[
                    pl.BlockSpec((C_out, C_in), lambda n: (0, 0)),          # weight
                    pl.BlockSpec((C_out, 1), lambda n: (0, 0)),             # gamma
                    pl.BlockSpec((C_out, 1), lambda n: (0, 0)),             # beta
                    pl.BlockSpec((pl.Squeezed(), C_in, S), lambda n: (n, 0, 0)),
                ],
                out_specs=pl.BlockSpec((pl.Squeezed(), C_out, S),
                                       lambda n: (n, 0, 0)),
            ),
            compiler_params=pltpu.CompilerParams(
                dimension_semantics=("parallel",),
                vmem_limit_bytes=vmem_limit),
        )(w_mm, g_col, b_col, x_flat)
        return out_flat.reshape(N, C_out, D, H, W)

    # ---------------- fallback: two passes over S tiles (very large volumes) -----
    if tile_s is None:
        tile_s = _pick_tile_s(S, C_in, C_out, isz_x, isz_o, budget)
    tile_s = max(128, _round_up(tile_s, 128))
    nS = pl.cdiv(S, tile_s)
    ragged = (S % tile_s) != 0
    inv_s = 1.0 / float(S)

    # pass 1: per-sample stats of z = W @ x, folded into a (scale, shift) pair.
    def stats_kernel(w_ref, g_ref, b_ref, x_ref, ss_ref, sum_ref, sumsq_ref):
        s_idx = pl.program_id(1)

        @pl.when(s_idx == 0)
        def _():
            sum_ref[...] = jnp.zeros_like(sum_ref)
            sumsq_ref[...] = jnp.zeros_like(sumsq_ref)

        xt = x_ref[...]                                              # (C_in, tile_s)
        if ragged:
            col = jax.lax.broadcasted_iota(jnp.int32, xt.shape, 1)
            xt = jnp.where(s_idx * tile_s + col < S, xt, jnp.zeros_like(xt))
        z = jnp.dot(w_ref[...], xt, preferred_element_type=jnp.float32)
        sum_ref[...] += jnp.sum(z, axis=-1, keepdims=True)
        sumsq_ref[...] += jnp.sum(z * z, axis=-1, keepdims=True)

        @pl.when(s_idx == pl.num_programs(1) - 1)
        def _():
            mean = sum_ref[...] * inv_s
            # f32-accumulated E[z^2] - E[z]^2 (clamped); z itself is f32 from the MXU.
            var = jnp.maximum(sumsq_ref[...] * inv_s - mean * mean, 0.0)
            scale = g_ref[...] * jax.lax.rsqrt(var + EPS)
            ss_ref[:, 0:1] = scale
            ss_ref[:, 1:2] = b_ref[...] - scale * mean

    scale_shift = pl.pallas_call(
        stats_kernel,
        out_shape=jax.ShapeDtypeStruct((N, C_out, 2), jnp.float32),
        grid_spec=pltpu.PrefetchScalarGridSpec(
            num_scalar_prefetch=0,
            grid=(N, nS),
            in_specs=[
                pl.BlockSpec((C_out, C_in), lambda n, s: (0, 0)),            # weight
                pl.BlockSpec((C_out, 1), lambda n, s: (0, 0)),               # gamma
                pl.BlockSpec((C_out, 1), lambda n, s: (0, 0)),               # beta
                pl.BlockSpec((pl.Squeezed(), C_in, tile_s), lambda n, s: (n, 0, s)),
            ],
            out_specs=pl.BlockSpec((pl.Squeezed(), C_out, 2), lambda n, s: (n, 0, 0)),
            scratch_shapes=[
                pltpu.VMEM((C_out, 1), jnp.float32),     # running sum(z)
                pltpu.VMEM((C_out, 1), jnp.float32),     # running sum(z*z)
            ],
        ),
        compiler_params=pltpu.CompilerParams(
            dimension_semantics=("parallel", "arbitrary"),
            vmem_limit_bytes=vmem_limit),
    )(w_mm, g_col, b_col, x_flat)

    # pass 2: y = scale * (W @ x) + shift, LeakyReLU, write.
    def apply_kernel(w_ref, ss_ref, x_ref, o_ref):
        z = jnp.dot(w_ref[...], x_ref[...], preferred_element_type=jnp.float32)
        y = ss_ref[:, 0:1] * z + ss_ref[:, 1:2]
        o_ref[...] = jnp.where(y >= 0, y, NEG_SLOPE * y).astype(o_ref.dtype)

    out_flat = pl.pallas_call(
        apply_kernel,
        out_shape=jax.ShapeDtypeStruct((N, C_out, S), out_dtype),
        grid_spec=pltpu.PrefetchScalarGridSpec(
            num_scalar_prefetch=0,
            grid=(N, nS),
            in_specs=[
                pl.BlockSpec((C_out, C_in), lambda n, s: (0, 0)),
                pl.BlockSpec((pl.Squeezed(), C_out, 2), lambda n, s: (n, 0, 0)),
                pl.BlockSpec((pl.Squeezed(), C_in, tile_s), lambda n, s: (n, 0, s)),
            ],
            out_specs=pl.BlockSpec((pl.Squeezed(), C_out, tile_s),
                                   lambda n, s: (n, 0, s)),
        ),
        compiler_params=pltpu.CompilerParams(
            dimension_semantics=("parallel", "parallel"),
            vmem_limit_bytes=vmem_limit),
    )(w_mm, scale_shift, x_flat)

    return out_flat.reshape(N, C_out, D, H, W)


if __name__ == "__main__":
    key = jax.random.PRNGKey(0)
    k_x, k_w, k_b, k_g, k_be = jax.random.split(key, 5)

    # S = 7*6*6 = 252 is not 128-aligned: exercises the no-pad full-slab fast path
    # and (when forced) the tiled path with a ragged, in-kernel-masked last tile.
    N, C_in, C_out = 2, 4, 8
    D, H, W = 7, 6, 6

    x = jax.random.normal(k_x, (N, C_in, D, H, W), dtype=jnp.float32)
    weight = jax.random.normal(k_w, (C_out, C_in), dtype=jnp.float32) * 0.1
    bias = jax.random.normal(k_b, (C_out,), dtype=jnp.float32) * 0.1
    gamma = 1.0 + 0.1 * jax.random.normal(k_g, (C_out,), dtype=jnp.float32)
    beta = 0.1 * jax.random.normal(k_be, (C_out,), dtype=jnp.float32)

    def reference(xv):
        # Full module semantics (incl. the conv bias, which InstanceNorm cancels).
        y = jnp.einsum("oc,ncs->nos", weight,
                       xv.reshape(N, C_in, -1).astype(jnp.float32))
        y = y + bias[None, :, None]
        mean = y.mean(-1, keepdims=True)
        var = ((y - mean) ** 2).mean(-1, keepdims=True)
        yh = (y - mean) / jnp.sqrt(var + EPS)
        yh = yh * gamma[None, :, None] + beta[None, :, None]
        return jnp.where(yh >= 0, yh, NEG_SLOPE * yh).reshape(N, C_out, D, H, W)

    ref = reference(x)

    # Single-pass fast path (the common gating-signal regime).
    out_fast = unet_grid_gating_signal3(x, weight, bias, gamma, beta)
    jax.block_until_ready(out_fast)
    assert out_fast.shape == ref.shape
    assert jnp.allclose(out_fast, ref, atol=2e-4, rtol=2e-4), "fast path mismatch"

    # Forced two-pass path with small tiles: exercises multi-tile accumulation and
    # the ragged masked last tile (S=252, tile_s=128 -> 2 tiles).
    out_tiled = unet_grid_gating_signal3(x, weight, bias, gamma, beta,
                                         tile_s=128, force_two_pass=True)
    jax.block_until_ready(out_tiled)
    assert jnp.allclose(out_tiled, ref, atol=2e-4, rtol=2e-4), "two-pass mismatch"

    # bf16 input smoke test through the bf16-native MXU fast path.
    x_bf16 = x.astype(jnp.bfloat16)
    out_bf16 = unet_grid_gating_signal3(x_bf16, weight, bias, gamma, beta)
    jax.block_until_ready(out_bf16)
    ref_bf16 = reference(x_bf16.astype(jnp.float32))
    assert jnp.allclose(out_bf16.astype(jnp.float32), ref_bf16,
                        atol=1e-1, rtol=1e-1), "bf16 path mismatch"

    print("KERNEL_OK")
</pallas_src>

<mosaic_0001>
module attributes {stable_mosaic.version = 11 : i64} {
  func.func @fused_kernel(%arg0: i32, %arg1: memref<8x4xf32, #tpu.memory_space<vmem>>, %arg2: memref<8x1xf32, #tpu.memory_space<vmem>>, %arg3: memref<8x1xf32, #tpu.memory_space<vmem>>, %arg4: memref<1x4x252xf32, #tpu.memory_space<vmem>>, %arg5: memref<1x8x252xf32, #tpu.memory_space<vmem>>) attributes {dimension_semantics = [#tpu.dimension_semantics<parallel>], iteration_bounds = array<i64: 2>, scalar_prefetch = 0 : i64, scratch_operands = 0 : i64, tpu.core_type = #tpu.core_type<tc>, window_params = [{pipeline_mode = #tpu.pipeline_mode<synchronous>, transform_indices = @transform_0, window_bounds = array<i64: 8, 4>}, {pipeline_mode = #tpu.pipeline_mode<synchronous>, transform_indices = @transform_1, window_bounds = array<i64: 8, 1>}, {pipeline_mode = #tpu.pipeline_mode<synchronous>, transform_indices = @transform_2, window_bounds = array<i64: 8, 1>}, {transform_indices = @transform_3, window_bounds = array<i64: 1, 4, 252>}, {transform_indices = @transform_4, window_bounds = array<i64: 1, 8, 252>}]} {
    %c0 = arith.constant 0 : index
    %c0_0 = arith.constant 0 : index
    %0 = vector.load %arg1[%c0, %c0_0] : memref<8x4xf32, #tpu.memory_space<vmem>>, vector<8x4xf32>
    %c0_1 = arith.constant 0 : index
    %c0_2 = arith.constant 0 : index
    %c0_3 = arith.constant 0 : index
    %1 = vector.load %arg4[%c0_1, %c0_2, %c0_3] : memref<1x4x252xf32, #tpu.memory_space<vmem>>, vector<1x4x252xf32>
    %2 = vector.shape_cast %1 : vector<1x4x252xf32> to vector<4x252xf32>
    %cst = arith.constant dense<0.000000e+00> : vector<8x252xf32>
    %3 = tpu.matmul %0, %2, %cst {dimension_numbers = #tpu.dot_dimension_numbers<[1], [0], [0], [1], [0, 0, 1, 1], [], []>} : vector<8x4xf32>, vector<4x252xf32>, vector<8x252xf32> -> vector<8x252xf32>
    %cst_4 = arith.constant dense<0.000000e+00> : vector<8xf32>
    %4 = vector.multi_reduction <add>, %3, %cst_4 [1] : vector<8x252xf32> to vector<8xf32>
    %5 = vector.shape_cast %4 : vector<8xf32> to vector<8x1xf32>
    %cst_5 = arith.constant 2.520000e+02 : f32
    %6 = vector.broadcast %cst_5 : f32 to vector<8x1xf32>
    %7 = arith.divf %5, %6 : vector<8x1xf32>
    %8 = vector.broadcast %7 : vector<8x1xf32> to vector<8x252xf32>
    %9 = arith.subf %3, %8 : vector<8x252xf32>
    %10 = arith.mulf %9, %9 : vector<8x252xf32>
    %cst_6 = arith.constant dense<0.000000e+00> : vector<8xf32>
    %11 = vector.multi_reduction <add>, %10, %cst_6 [1] : vector<8x252xf32> to vector<8xf32>
    %12 = vector.shape_cast %11 : vector<8xf32> to vector<8x1xf32>
    %cst_7 = arith.constant 2.520000e+02 : f32
    %13 = vector.broadcast %cst_7 : f32 to vector<8x1xf32>
    %14 = arith.divf %12, %13 : vector<8x1xf32>
    %c0_8 = arith.constant 0 : index
    %c0_9 = arith.constant 0 : index
    %15 = vector.load %arg2[%c0_8, %c0_9] : memref<8x1xf32, #tpu.memory_space<vmem>>, vector<8x1xf32>
    %cst_10 = arith.constant 9.99999974E-6 : f32
    %16 = vector.broadcast %cst_10 : f32 to vector<8x1xf32>
    %17 = arith.addf %14, %16 : vector<8x1xf32>
    %18 = math.rsqrt %17 : vector<8x1xf32>
    %19 = arith.mulf %15, %18 : vector<8x1xf32>
    %20 = vector.broadcast %19 : vector<8x1xf32> to vector<8x252xf32>
    %21 = arith.mulf %20, %9 : vector<8x252xf32>
    %c0_11 = arith.constant 0 : index
    %c0_12 = arith.constant 0 : index
    %22 = vector.load %arg3[%c0_11, %c0_12] : memref<8x1xf32, #tpu.memory_space<vmem>>, vector<8x1xf32>
    %23 = vector.broadcast %22 : vector<8x1xf32> to vector<8x252xf32>
    %24 = arith.addf %21, %23 : vector<8x252xf32>
    %cst_13 = arith.constant 0.000000e+00 : f32
    %25 = vector.broadcast %cst_13 : f32 to vector<8x252xf32>
    %26 = arith.cmpf oge, %24, %25 : vector<8x252xf32>
    %cst_14 = arith.constant 0.00999999977 : f32
    %27 = vector.broadcast %cst_14 : f32 to vector<8x252xf32>
    %28 = arith.mulf %27, %24 : vector<8x252xf32>
    %29 = arith.select %26, %24, %28 : vector<8x252xi1>, vector<8x252xf32>
    %c0_15 = arith.constant 0 : index
    %c0_16 = arith.constant 0 : index
    %c0_17 = arith.constant 0 : index
    %30 = vector.load %arg5[%c0_15, %c0_16, %c0_17] : memref<1x8x252xf32, #tpu.memory_space<vmem>>, vector<1x8x252xf32>
    %31 = vector.shape_cast %30 : vector<1x8x252xf32> to vector<8x252xf32>
    %32 = vector.shape_cast %29 : vector<8x252xf32> to vector<1x8x252xf32>
    tpu.vector_store %arg5[%c0_15, %c0_16, %c0_17], %32 {strides = array<i32>} : memref<1x8x252xf32, #tpu.memory_space<vmem>>, vector<1x8x252xf32>,
    return
  }
  func.func @transform_0(%arg0: i32) -> (i32, i32) {
    %c0_i32 = arith.constant 0 : i32
    %c0_i32_0 = arith.constant 0 : i32
    %c0_i32_1 = arith.constant 0 : i32
    return %c0_i32, %c0_i32_0 : i32, i32
  }
  func.func @transform_1(%arg0: i32) -> (i32, i32) {
    %c0_i32 = arith.constant 0 : i32
    %c0_i32_0 = arith.constant 0 : i32
    %c0_i32_1 = arith.constant 0 : i32
    return %c0_i32, %c0_i32_0 : i32, i32
  }
  func.func @transform_2(%arg0: i32) -> (i32, i32) {
    %c0_i32 = arith.constant 0 : i32
    %c0_i32_0 = arith.constant 0 : i32
    %c0_i32_1 = arith.constant 0 : i32
    return %c0_i32, %c0_i32_0 : i32, i32
  }
  func.func @transform_3(%arg0: i32) -> (i32, i32, i32) {
    %c0_i32 = arith.constant 0 : i32
    %c0_i32_0 = arith.constant 0 : i32
    %c0_i32_1 = arith.constant 0 : i32
    return %arg0, %c0_i32, %c0_i32_0 : i32, i32, i32
  }
  func.func @transform_4(%arg0: i32) -> (i32, i32, i32) {
    %c0_i32 = arith.constant 0 : i32
    %c0_i32_0 = arith.constant 0 : i32
    %c0_i32_1 = arith.constant 0 : i32
    return %arg0, %c0_i32, %c0_i32_0 : i32, i32, i32
  }
}

</mosaic_0001>

<bundles_post_ra>
// kernel: tpu_custom_call.1
= control target key start
LH: loop header
LB: loop body
LE: loop exit
PB: predicated region body
PF: predicated region fallthrough
CT: control target
= control target key end

     0   :  { %9 = vsyncpa [#allocation3], 0  ;;  %s664_s0 = inlined_call_operand.vmem [shape: f32[8,4], index: 0, kind: input, shape index: {}]   ;;  %s665_s1 = inlined_call_operand.vmem [shape: f32[8,1], index: 1, kind: input, shape index: {}]   ;;  %s666_s2 = inlined_call_operand.vmem [shape: f32[8,1], index: 2, kind: input, shape index: {}]   ;;  %s667_s3 = inlined_call_operand.vmem [shape: f32[2,4,252], index: 3, kind: input, shape index: {}]   ;;  %s668_s4 = inlined_call_operand.hbm [shape: f32[2,8,252], index: 4, kind: output, shape index: {}]  }
   0x1   :  { %11 = vsyncpa [#allocation3 + $0x1], 0  ;;  %s552_s15 = smov 0   ;;  %s554_s16 = smov 0  }
   0x2   :  { %s556_s17 = smov 0   ;;  %s558_s18 = smov 0  }
   0x3 LB: > { %s573_s19 = sadd.s32 4294967295, %s522_s18   ;;  %s397_s20 = sadd.s32 4294967294, %s522_s18   ;;  %s522_s18 = sphi %s558_s18, %s674_s18   ;;  %s518_s17 = sphi %s556_s17, %s673_s17   ;;  %s514_s16 = sphi %s554_s16, %s672_s16   ;;  %s510_s15 = sphi %s552_s15, %s671_s15  }
   0x4   : > { %s577_s21 = sadd.s32 1, %s522_s18   ;;  %s113_s22 = sadd.s32 1, %s518_s17 }
   0x5   : > { %s110_s23 = ssub.s32 %s522_s18, %s577_s21  ;;  %p123_p0 = scmp.ne.s32.totalorder %s518_s17, %s514_s16 }
   0x6   : > { %p111_p1 = scmp.eq.s32.totalorder %s110_s23, 0  ;;  %p124_p2 = scmp.eq.s32.totalorder %s573_s19, 1 }
   0x7   : > { %p129_p3 = scmp.ne.s32.totalorder %s514_s16, %s510_s15  ;;  %p130_p4 = scmp.eq.s32.totalorder %s397_s20, 1 }
   0x8   : > { %s588_s24 = scalar_select %p111_p1, %s518_s17, %s113_s22  }
   0x9   : > { %p590_p5 = por %p124_p2, %p123_p0  ;;  %p594_p6 = por %p130_p4, %p129_p3 }
   0xa   : > { %p400_p7 = scmp.ge.s32.totalorder %s522_s18, 1  ;;  %p165_p8 = scmp.lt.s32.totalorder %s522_s18, 3 }
   0xc   : > { %p166_p9 = pnand %p400_p7, %p165_p8 }
   0xd   : > { %p191_p10 = scmp.lt.s32.totalorder (!%p166_p9), %s573_s19, 1  ;;  %v524_v0 = vmov (!%p166_p9), 0.0   ;;  %vm204_vm0 = vcmask (!%p166_p9), 1043456   ;;  %v196_v3 = vld [vmem:[%s664_s0] sm:$0xff] (!%p166_p9)  ;;  %vm200_vm1 = vcmask (!%p166_p9), 31744   ;;  %vm280_vm2 = vcmask (!%p166_p9), 1014784  }
   0xe   : > { %169 = sbr.rel (%p166_p9) target bundleno = 707 (0x2c3), region = 36  ;;  %273 = vmatprep.mubr.f32.mxu0 (!%p166_p9), %v524_v0  ;;  %v525_v16 = vmov (!%p166_p9), 0   ;;  %v296_v20 = vld [vmem:[%s665_s1] sm:$0xff] (!%p166_p9)  ;;  %s188_s12 = sand.u32 (!%p166_p9), 1, %s514_s16  }
   0xf   : > { %455 = vset.pattern.permute.xlu1 (!%p166_p9), %v525_v16  ;;  %456 = vset.pattern.permute.xlu0 (!%p166_p9), %v525_v16  ;;  %v307_v23 = vld [vmem:[%s666_s2] sm:$0xff] (!%p166_p9)  ;;  %s401_s13 = sshll.u32 (!%p166_p9), %s188_s12, 4  ;;  %s413_s14 = sshll.u32 (!%p166_p9), %s573_s19, 8 }
  0x10   : > { %s190_s20 = scalar_lea.vmem (!%p166_p9), [#allocation2], %s401_s13  ;;  %s526_s30 = smov (!%p166_p9), [#allocation2]  }
  0x11   : > { %s338_s22 = sshll.u32 (!%p166_p9), %s190_s20, 4  ;;  %s623_s22 = int_to_ptr.vmem [resolvable:$true] %s338_s22 }
  0x12   : > { %s460_s29 = scalar_lea.vmem (!%p166_p9), %s623_s22, 256 }
  0x13   : > { %p461_p11 = scmp.ne.s32.totalorder (!%p166_p9), %s623_s22, %s460_s29 }
  0x15   : > { %s192_s27 = scalar_select %p191_p10, %s573_s19, 1 }
  0x16   : > { %s324_s19 = scalar_lea.sflag [#allocation3], %s188_s12  ;;  %p462_p12 = pnand %p461_p11, %p590_p5 }
  0x17   : > { %s412_s28 = sshll.u32 %s192_s27, 3 }
  0x18   : > { %s195_s5 = scalar_lea.vmem %s667_s3, %s412_s28  ;;  %s621_s28 = scalar_lea.hbm %s668_s4, %s413_s14 }
  0x19   : > { %v197_v1 = vld [vmem:[%s195_s5] sm:$0xff]  ;;  %p463_p13 = pneg %p462_p12  ;;  %s464_s5 = sshll.u32 %s526_s30, 4  ;;  %s465_s5 = int_to_ptr.vmem [resolvable:$false] %s464_s5 }
  0x1a   : > { %v199_v2 = vcombine.high %v197_v1, %v197_v1  ;;  %s466_s6 = scalar_lea.vmem %s465_s5, 512  ;;  %p467_p0 = scmp.lt.s32.totalorder %s623_s22, %s465_s5 }
  0x1b   : > { %p468_p1 = scmp.lt.s32.totalorder %s466_s6, %s460_s29 }
  0x1c   : > { %404 = vmatprep.subr.msk.mxu0 %vm204_vm0, %v199_v2 }
  0x1d   : > { %405 = vmatpush1.msk.msra.mxu0 %vm204_vm0, %v197_v1  ;;  %p469_p2 = por %p468_p1, %p467_p0 }
  0x1e   : > { %406 = vmatmul.mubr.msk.f32.vlgmr.msra.gmra.mrb[0].mxu0 %vm200_vm1, %v196_v3 }
  0x1f   : > { %p470_p3 = pnand %p469_p2, %p463_p13 }
  0xf1   : > { %v275_v4 = vpop.f32.mrb[0].mxu0 }
  0xf2   : > { %v277_v5 = vpop.f32.mrb[1].mxu0 }
  0xf3   : > { %v281_v6 = vsel %vm280_vm2, %v277_v5, 0.0 }
  0xf4   : > { %v282_v7 = vadd.f32 %v281_v6, %v275_v4 }
  0xf6   : > { %283 = vadd.xlane.f32.xlu0 %v282_v7 }
 0x183   : > { %v284_v8 = vpop.xlane.xlu0 %283 }
 0x184   : > { %v286_v9 = vmul.f32 0.003968254, %v284_v8 }
 0x186   : > { %v287_v10 = vsub.f32 %v275_v4, %v286_v9  ;;  %v288_v11 = vsub.f32 %v277_v5, %v286_v9 }
 0x188   : > { %v289_v12 = vmul.f32 %v287_v10, %v287_v10  ;;  %v290_v13 = vmul.f32 %v288_v11, %v288_v11 }
 0x18a   : > { %v291_v14 = vsel %vm280_vm2, %v290_v13, 0.0 }
 0x18b   : > { %v292_v15 = vadd.f32 %v291_v14, %v289_v12 }
 0x18d   : > { %293 = vadd.xlane.f32.xlu0 %v292_v15 }
 0x21a   : > { %v294_v17 = vpop.xlane.xlu0 %293 }
 0x21b   : > { %v295_v18 = vmul.f32 0.003968254, %v294_v17 }
 0x21d   : > { %v297_v19 = vadd.f32 1e-05, %v295_v18 }
 0x21f   : > { %458 = vrsqrt.f32 %v297_v19 }
 0x229   : > { %v459_v21 = vpop.eup %458 }
 0x22a   : > { %v299_v22 = vmul.f32 %v459_v21, %v296_v20 }
 0x22c   : > { %302 = vperm.xlu1 %455, %v299_v22  }
 0x230   : > { %310 = vperm.xlu1 %455, %v307_v23  }
 0x2ab   : > { %v303_v24 = vpop.permute.xlu1 %302 }
 0x2ac   : > { %v305_v25 = vmul.f32 %v303_v24, %v287_v10  ;;  %v306_v26 = vmul.f32 %v303_v24, %v288_v11 }
 0x2af   : > { %v311_v27 = vpop.permute.xlu1 %310 }
 0x2b0   : > { %v313_v28 = vadd.f32 %v311_v27, %v305_v25  ;;  %v314_v29 = vadd.f32 %v311_v27, %v306_v26 }
 0x2b2   : > { %vm315_vm3 = vcmp.ge.f32.partialorder %v313_v28, 0.0  ;;  %vm316_vm4 = vcmp.ge.f32.partialorder %v314_v29, 0.0  ;;  %v317_v30 = vmul.f32 0.01, %v313_v28  ;;  %v318_v31 = vmul.f32 0.01, %v314_v29 }
 0x2b4   : > { %v319_v32 = vsel %vm315_vm3, %v313_v28, %v317_v30  ;;  %v320_v33 = vsel %vm316_vm4, %v314_v29, %v318_v31 }
 0x2b5   : > { %321 = vst [vmem:[%s190_s20] sm:$0xff] %v319_v32  ;;  %322 = vst.msk [vmem:[%s190_s20 + $0x8] sm:$0xff] %vm280_vm2, %v320_v33 }
 0x2b6   : > { %473 = shalt.err (!%p470_p3)
}
 0x2b7   : > { %s474_s7 = scalar_lea.hbm %s621_s28, 256  ;;  %s478_s10 = scalar_lea.hbm %s668_s4, 512 }
 0x2b8   : > { %p475_p4 = scmp.ne.s32.totalorder %s621_s28, %s474_s7  ;;  %p479_p9 = scmp.lt.u32.totalorder %s621_s28, %s668_s4 }
 0x2b9   : > { %p480_p10 = scmp.lt.u32.totalorder %s478_s10, %s474_s7  ;;  %p482_p12 = scmp.lt.u32.totalorder %s474_s7, %s621_s28 }
 0x2ba   : > { %p476_p7 = pnand %p475_p4, %p590_p5 }
 0x2bb   : > { %p481_p11 = por %p480_p10, %p479_p9 }
 0x2bc   : > { %p477_p8 = pneg %p476_p7 }
 0x2bd   : > { %p483_p13 = por %p482_p12, %p481_p11 }
 0x2bf   : > { %p484_p0 = pnand %p483_p13, %p477_p8 }
 0x2c1   : > { %487 = shalt.err (!%p484_p0)
}
 0x2c2   : > { %414 = dma.vmem_to_hbm [thread:$0]  (%p590_p5), %s623_s22, 256, %s621_s28, %s324_s19  }
 0x2c3 PF: > { %p420_p1 = scmp.ge.s32.totalorder %s522_s18, 2  ;;  %s350_s13 = sand.u32 1, %s510_s15  }
 0x2c4   : > { %s351_s14 = scalar_lea.sflag [#allocation3], %s350_s13 }
 0x2c5   : > { %p417_p2 = pnand %p420_p1, %p594_p6 }
 0x2c7   : > { %505 = dma.done.wait (!%p417_p2), %s351_s14, 256  }
 0x2c8   : > { %507 = vsyncadd (!%p417_p2), %s351_s14, 4294967040  ;;  %p14_p3 = scmp.ge.s32.totalorder %s577_s21, 4   ;;  %s671_s15 = smov %s514_s16 }
 0x2c9   : > { %s672_s16 = smov %s518_s17  ;;  %s673_s17 = smov %s588_s24 }
 0x2ca   : > { %s674_s18 = smov %s577_s21  ;;  %16 = sbr.rel (!%p14_p3) target bundleno = 3 (0x3), region = 71 }
 0x2d1   :  { %356 = vsyncpa [#allocation3], 1 }
 0x2d2   :  { %358 = vsyncpa [#allocation3 + $0x1], 1 }

</bundles_post_ra>
